<compile_context>
chip_gen: v6e
topology: v6e:2x2x1
jax: 0.10.0
libtpu: 0.0.40
codegen_flags: <defaults>
</compile_context>

<pallas_src>
import math

import jax
import jax.numpy as jnp
from jax import lax
from jax.experimental import pallas as pl
from jax.experimental.pallas import tpu as pltpu

# ---- small synthetic config (consistent with the module's constraints) ----
HIDDEN = 32
N_HEADS = 4
HEAD_DIM = HIDDEN // N_HEADS          # 8
HALF_DIM = HEAD_DIM // 2              # 4
SEQ = 8
BATCH = 2
FFN = 4 * HIDDEN                      # 128
EPS = 1e-5
ROPE_THETA = 10000.0

BS = BATCH * SEQ                      # 16 flattened tokens
ROWS = BATCH * N_HEADS * SEQ          # 64 stacked attention rows
UP_W = FFN + 2 * HIDDEN + 3 * HEAD_DIM    # 216 fused up-projection width
DOWN_W = FFN + HIDDEN                 # 160 fused down-projection rows
ROPE_W = 2 * HIDDEN + 2 * HEAD_DIM    # 80  fused rope-table width
NEG_INF = -1e30


def _erf_f32(z):
    # Abramowitz & Stegun 7.1.26 (abs err ~1.5e-7): exact-erf GELU (nn.GELU()
    # default) without relying on an erf lowering in Mosaic.
    a1, a2, a3, a4, a5 = (0.254829592, -0.284496736, 1.421413741,
                          -1.453152027, 1.061405429)
    p = 0.3275911
    az = jnp.abs(z)
    t = 1.0 / (1.0 + p * az)
    poly = ((((a5 * t + a4) * t + a3) * t + a2) * t + a1) * t
    y = 1.0 - poly * jnp.exp(-az * az)
    return jnp.where(z >= 0, y, -y)


def _gelu_exact(x):
    return 0.5 * x * (1.0 + _erf_f32(x * (1.0 / math.sqrt(2.0))))


def falcon_decoder_kernel(x_ref, w_up_ref, b_up_ref, w_down_ref,
                          rope_ref, bias_ref, o_ref):
    x = x_ref[...]                                           # (BS, HIDDEN) f32

    # --- shared LayerNorm statistics (affines folded into w_up / b_up) ---
    mu = jnp.mean(x, axis=-1, keepdims=True)
    var = jnp.mean(jnp.square(x - mu), axis=-1, keepdims=True)
    xhat = (x - mu) * lax.rsqrt(var + EPS)

    # --- single fused up-projection: [h1 | q | qP | k | kP | v] ---
    up = jnp.dot(xhat, w_up_ref[...],
                 preferred_element_type=jnp.float32) + b_up_ref[...]
    h1 = up[:, :FFN]                                               # (BS, 128)
    q = up[:, FFN:FFN + HIDDEN]                                    # (BS, 32)
    q_swap = up[:, FFN + HIDDEN:FFN + 2 * HIDDEN]                  # (BS, 32)
    k = up[:, FFN + 2 * HIDDEN:FFN + 2 * HIDDEN + HEAD_DIM]        # (BS, 8)
    k_swap = up[:, FFN + 2 * HIDDEN + HEAD_DIM:
                FFN + 2 * HIDDEN + 2 * HEAD_DIM]                   # (BS, 8)
    v = up[:, FFN + 2 * HIDDEN + 2 * HEAD_DIM:]                    # (BS, 8)

    rope = rope_ref[...]
    cos_q = rope[:, :HIDDEN]
    sin_q = rope[:, HIDDEN:2 * HIDDEN]
    cos_k = rope[:, 2 * HIDDEN:2 * HIDDEN + HEAD_DIM]
    sin_k = rope[:, 2 * HIDDEN + HEAD_DIM:]

    # --- RoPE: pure FMA (swap-halves permutation is baked into the weights) ---
    q_rot = q * cos_q + q_swap * sin_q                             # (BS, 32)
    k_rot = k * cos_k + k_swap * sin_k                             # (BS, 8)

    # --- attention: batch AND heads stacked along rows, one pass for all ---
    q_all = jnp.concatenate(
        [q_rot[b * SEQ:(b + 1) * SEQ, h * HEAD_DIM:(h + 1) * HEAD_DIM]
         for b in range(BATCH) for h in range(N_HEADS)], axis=0)   # (ROWS, D)

    scale = 1.0 / math.sqrt(HEAD_DIM)
    s = lax.dot_general(q_all, k_rot, (((1,), (1,)), ((), ())),
                        preferred_element_type=jnp.float32) * scale  # (ROWS, BS)
    s = s + bias_ref[...]                       # causal AND same-batch mask
    m = jnp.max(s, axis=-1, keepdims=True)
    e = jnp.exp(s - m)
    p = e * pl.reciprocal(jnp.sum(e, axis=-1, keepdims=True), approx=True)
    o_all = jnp.dot(p, v, preferred_element_type=jnp.float32)      # (ROWS, D)

    # un-stack heads back to (BS, HIDDEN) with the [head, dim] lane layout
    attn_cat = jnp.concatenate(
        [jnp.concatenate(
            [o_all[(b * N_HEADS + h) * SEQ:(b * N_HEADS + h + 1) * SEQ, :]
             for h in range(N_HEADS)], axis=1)
         for b in range(BATCH)], axis=0)                            # (BS, 32)

    # --- fused down projection + residual: out = x + [gelu(h1) | attn] @ [w2; wd]
    down_in = jnp.concatenate([_gelu_exact(h1), attn_cat], axis=1)  # (BS, 160)
    o_ref[...] = x + jnp.dot(down_in, w_down_ref[...],
                             preferred_element_type=jnp.float32)


def _swap_head_halves(w):
    """Right-multiply by the permutation swapping (re||im) halves in each head."""
    blocks = []
    for start in range(0, w.shape[-1], HEAD_DIM):
        blk = w[..., start:start + HEAD_DIM]
        blocks.append(jnp.concatenate(
            [blk[..., HALF_DIM:], blk[..., :HALF_DIM]], axis=-1))
    return jnp.concatenate(blocks, axis=-1)


def falcon_decoder_layer(x, params, cos, sin):
    B, S, H = x.shape
    assert (B, S, H) == (BATCH, SEQ, HIDDEN)
    x2 = x.reshape(B * S, H)

    w_a = params["ln_attn_w"].reshape(H, 1)
    b_a = params["ln_attn_b"].reshape(1, H)
    w_m = params["ln_mlp_w"].reshape(H, 1)
    b_m = params["ln_mlp_b"].reshape(1, H)

    # fold LN affines into the projection weights (kernel only sees xhat)
    wq = w_a * params["wq"]; bq = b_a @ params["wq"]
    wk = w_a * params["wk"]; bk = b_a @ params["wk"]
    wv = w_a * params["wv"]; bv = b_a @ params["wv"]
    w1 = w_m * params["w1"]; b1 = b_m @ params["w1"]

    w_up = jnp.concatenate(
        [w1, wq, _swap_head_halves(wq), wk, _swap_head_halves(wk), wv], axis=1)
    b_up = jnp.concatenate(
        [b1, bq, _swap_head_halves(bq), bk, _swap_head_halves(bk), bv], axis=1)
    w_down = jnp.concatenate([params["w2"], params["wd"]], axis=0)   # (160, 32)

    # RoPE tables in the flat lane layout, signs baked in -> pure FMA in-kernel
    cos_h = jnp.concatenate([cos, cos], axis=1)            # (S, D)
    sin_h = jnp.concatenate([-sin, sin], axis=1)           # (S, D)
    rope_tab = jnp.concatenate(
        [jnp.tile(cos_h, (B, N_HEADS)), jnp.tile(sin_h, (B, N_HEADS)),
         jnp.tile(cos_h, (B, 1)), jnp.tile(sin_h, (B, 1))], axis=1)  # (BS, 80)

    # additive mask for the (batch, head, query)-stacked score rows
    r = jnp.arange(ROWS)
    c = jnp.arange(B * S)
    same_batch = (r[:, None] // (N_HEADS * S)) == (c[None, :] // S)
    causal = (r[:, None] % S) >= (c[None, :] % S)
    mask_bias = jnp.where(same_batch & causal, 0.0, NEG_INF).astype(jnp.float32)

    full = lambda shape: pl.BlockSpec(shape, lambda i: (0,) * len(shape))
    grid_spec = pltpu.PrefetchScalarGridSpec(
        num_scalar_prefetch=0,
        grid=(1,),                                          # single grid step
        in_specs=[
            full((B * S, H)),          # x
            full((H, UP_W)),           # fused up weights
            full((1, UP_W)),           # fused up bias (from LN biases)
            full((DOWN_W, H)),         # fused down weights [w2; wd]
            full((B * S, ROPE_W)),     # rope tables
            full((ROWS, B * S)),       # additive attention mask
        ],
        out_specs=full((B * S, H)),
    )
    fn = pl.pallas_call(
        falcon_decoder_kernel,
        out_shape=jax.ShapeDtypeStruct((B * S, H), jnp.float32),
        grid_spec=grid_spec,
        compiler_params=pltpu.CompilerParams(
            dimension_semantics=("arbitrary",)),
    )
    out = fn(x2, w_up, b_up, w_down, rope_tab, mask_bias)
    return out.reshape(B, S, H)


# ------------------------- pure-JAX reference ------------------------------
def falcon_decoder_reference(x, p, cos, sin):
    B, S, H = x.shape

    def ln(v, w, b):
        mu = v.mean(-1, keepdims=True)
        var = ((v - mu) ** 2).mean(-1, keepdims=True)
        return (v - mu) / jnp.sqrt(var + EPS) * w + b

    ln1 = ln(x, p["ln_attn_w"], p["ln_attn_b"])
    ln2 = ln(x, p["ln_mlp_w"], p["ln_mlp_b"])
    q = (ln1 @ p["wq"]).reshape(B, S, N_HEADS, HEAD_DIM)
    k = (ln1 @ p["wk"]).reshape(B, S, 1, HEAD_DIM)
    v = (ln1 @ p["wv"]).reshape(B, S, 1, HEAD_DIM)

    def rope(t):
        tr, ti = t[..., :HALF_DIM], t[..., HALF_DIM:]
        c = cos[None, :, None, :]
        s = sin[None, :, None, :]
        re = tr * c - ti * s
        im = tr * s + ti * c
        return jnp.stack([re, im], axis=-1).reshape(t.shape)

    q, k = rope(q), rope(k)
    k = jnp.broadcast_to(k, q.shape)
    vv = jnp.broadcast_to(v, q.shape)
    s = jnp.einsum("bqhd,bkhd->bhqk", q, k) / math.sqrt(HEAD_DIM)
    mask = jnp.tril(jnp.ones((S, S), bool))
    s = jnp.where(mask, s, -jnp.inf)
    pattn = jax.nn.softmax(s, axis=-1)
    o = jnp.einsum("bhqk,bkhd->bqhd", pattn, vv).reshape(B, S, H)
    attn = o @ p["wd"]
    mlp = jax.nn.gelu(ln2 @ p["w1"], approximate=False) @ p["w2"]
    return x + (mlp + attn)


if __name__ == "__main__":
    key = jax.random.PRNGKey(0)
    (kx, kq, kk, kv, kd, k1, k2,
     klw1, klb1, klw2, klb2) = jax.random.split(key, 11)
    std = 0.02
    params = {
        # non-trivial LN affines so the weight-folding path is actually exercised
        "ln_attn_w": 1.0 + 0.1 * jax.random.normal(klw1, (HIDDEN,), jnp.float32),
        "ln_attn_b": 0.1 * jax.random.normal(klb1, (HIDDEN,), jnp.float32),
        "ln_mlp_w": 1.0 + 0.1 * jax.random.normal(klw2, (HIDDEN,), jnp.float32),
        "ln_mlp_b": 0.1 * jax.random.normal(klb2, (HIDDEN,), jnp.float32),
        "wq": jax.random.normal(kq, (HIDDEN, HIDDEN), jnp.float32) * std,
        "wk": jax.random.normal(kk, (HIDDEN, HEAD_DIM), jnp.float32) * std,
        "wv": jax.random.normal(kv, (HIDDEN, HEAD_DIM), jnp.float32) * std,
        "wd": jax.random.normal(kd, (HIDDEN, HIDDEN), jnp.float32) * std,
        "w1": jax.random.normal(k1, (HIDDEN, FFN), jnp.float32) * std,
        "w2": jax.random.normal(k2, (FFN, HIDDEN), jnp.float32) * std,
    }

    # rotary tables (start_pos = 0, mask = "causal")
    inv_freq = 1.0 / (ROPE_THETA ** (jnp.arange(0, HEAD_DIM, 2, dtype=jnp.float32)
                                     / HEAD_DIM))
    t = jnp.arange(SEQ, dtype=jnp.float32)
    ang = jnp.outer(t, inv_freq)                      # (SEQ, HALF_DIM)
    cos, sin = jnp.cos(ang), jnp.sin(ang)

    x = jax.random.normal(kx, (BATCH, SEQ, HIDDEN), jnp.float32)

    out = falcon_decoder_layer(x, params, cos, sin)
    out = jax.block_until_ready(out)

    ref = falcon_decoder_reference(x, params, cos, sin)
    assert out.shape == (BATCH, SEQ, HIDDEN)
    assert jnp.allclose(out, ref, rtol=1e-4, atol=1e-4), "mismatch vs reference"

    print("KERNEL_OK")
</pallas_src>

<mosaic_0001>
module attributes {stable_mosaic.version = 11 : i64} {
  func.func @falcon_decoder_kernel(%arg0: i32, %arg1: memref<16x32xf32, #tpu.memory_space<vmem>>, %arg2: memref<32x216xf32, #tpu.memory_space<vmem>>, %arg3: memref<1x216xf32, #tpu.memory_space<vmem>>, %arg4: memref<160x32xf32, #tpu.memory_space<vmem>>, %arg5: memref<16x80xf32, #tpu.memory_space<vmem>>, %arg6: memref<64x16xf32, #tpu.memory_space<vmem>>, %arg7: memref<16x32xf32, #tpu.memory_space<vmem>>) attributes {dimension_semantics = [#tpu.dimension_semantics<arbitrary>], iteration_bounds = array<i64: 1>, scalar_prefetch = 0 : i64, scratch_operands = 0 : i64, tpu.core_type = #tpu.core_type<tc>, window_params = [{pipeline_mode = #tpu.pipeline_mode<synchronous>, transform_indices = @transform_0, window_bounds = array<i64: 16, 32>}, {pipeline_mode = #tpu.pipeline_mode<synchronous>, transform_indices = @transform_1, window_bounds = array<i64: 32, 216>}, {pipeline_mode = #tpu.pipeline_mode<synchronous>, transform_indices = @transform_2, window_bounds = array<i64: 1, 216>}, {pipeline_mode = #tpu.pipeline_mode<synchronous>, transform_indices = @transform_3, window_bounds = array<i64: 160, 32>}, {pipeline_mode = #tpu.pipeline_mode<synchronous>, transform_indices = @transform_4, window_bounds = array<i64: 16, 80>}, {pipeline_mode = #tpu.pipeline_mode<synchronous>, transform_indices = @transform_5, window_bounds = array<i64: 64, 16>}, {pipeline_mode = #tpu.pipeline_mode<synchronous>, transform_indices = @transform_6, window_bounds = array<i64: 16, 32>}]} {
    %c0 = arith.constant 0 : index
    %c0_0 = arith.constant 0 : index
    %0 = vector.load %arg1[%c0, %c0_0] : memref<16x32xf32, #tpu.memory_space<vmem>>, vector<16x32xf32>
    %cst = arith.constant dense<0.000000e+00> : vector<16xf32>
    %1 = vector.multi_reduction <add>, %0, %cst [1] : vector<16x32xf32> to vector<16xf32>
    %2 = vector.shape_cast %1 : vector<16xf32> to vector<16x1xf32>
    %cst_1 = arith.constant 3.200000e+01 : f32
    %3 = vector.broadcast %cst_1 : f32 to vector<16x1xf32>
    %4 = arith.divf %2, %3 : vector<16x1xf32>
    %5 = vector.broadcast %4 : vector<16x1xf32> to vector<16x32xf32>
    %6 = arith.subf %0, %5 : vector<16x32xf32>
    %7 = arith.mulf %6, %6 : vector<16x32xf32>
    %cst_2 = arith.constant dense<0.000000e+00> : vector<16xf32>
    %8 = vector.multi_reduction <add>, %7, %cst_2 [1] : vector<16x32xf32> to vector<16xf32>
    %9 = vector.shape_cast %8 : vector<16xf32> to vector<16x1xf32>
    %cst_3 = arith.constant 3.200000e+01 : f32
    %10 = vector.broadcast %cst_3 : f32 to vector<16x1xf32>
    %11 = arith.divf %9, %10 : vector<16x1xf32>
    %12 = vector.broadcast %4 : vector<16x1xf32> to vector<16x32xf32>
    %13 = arith.subf %0, %12 : vector<16x32xf32>
    %cst_4 = arith.constant 9.99999974E-6 : f32
    %14 = vector.broadcast %cst_4 : f32 to vector<16x1xf32>
    %15 = arith.addf %11, %14 : vector<16x1xf32>
    %16 = math.rsqrt %15 : vector<16x1xf32>
    %17 = vector.broadcast %16 : vector<16x1xf32> to vector<16x32xf32>
    %18 = arith.mulf %13, %17 : vector<16x32xf32>
    %c0_5 = arith.constant 0 : index
    %c0_6 = arith.constant 0 : index
    %19 = vector.load %arg2[%c0_5, %c0_6] : memref<32x216xf32, #tpu.memory_space<vmem>>, vector<32x216xf32>
    %cst_7 = arith.constant dense<0.000000e+00> : vector<16x216xf32>
    %20 = tpu.matmul %18, %19, %cst_7 {dimension_numbers = #tpu.dot_dimension_numbers<[1], [0], [0], [1], [0, 0, 1, 1], [], []>} : vector<16x32xf32>, vector<32x216xf32>, vector<16x216xf32> -> vector<16x216xf32>
    %c0_8 = arith.constant 0 : index
    %c0_9 = arith.constant 0 : index
    %21 = vector.load %arg3[%c0_8, %c0_9] : memref<1x216xf32, #tpu.memory_space<vmem>>, vector<1x216xf32>
    %22 = vector.broadcast %21 : vector<1x216xf32> to vector<16x216xf32>
    %23 = arith.addf %20, %22 : vector<16x216xf32>
    %24 = vector.extract_strided_slice %23 {offsets = [0, 0], sizes = [16, 128], strides = [1, 1]} : vector<16x216xf32> to vector<16x128xf32>
    %25 = vector.extract_strided_slice %23 {offsets = [0, 128], sizes = [16, 32], strides = [1, 1]} : vector<16x216xf32> to vector<16x32xf32>
    %26 = vector.extract_strided_slice %23 {offsets = [0, 160], sizes = [16, 32], strides = [1, 1]} : vector<16x216xf32> to vector<16x32xf32>
    %27 = vector.extract_strided_slice %23 {offsets = [0, 192], sizes = [16, 8], strides = [1, 1]} : vector<16x216xf32> to vector<16x8xf32>
    %28 = vector.extract_strided_slice %23 {offsets = [0, 200], sizes = [16, 8], strides = [1, 1]} : vector<16x216xf32> to vector<16x8xf32>
    %29 = vector.extract_strided_slice %23 {offsets = [0, 208], sizes = [16, 8], strides = [1, 1]} : vector<16x216xf32> to vector<16x8xf32>
    %c0_10 = arith.constant 0 : index
    %c0_11 = arith.constant 0 : index
    %30 = vector.load %arg5[%c0_10, %c0_11] : memref<16x80xf32, #tpu.memory_space<vmem>>, vector<16x80xf32>
    %31 = vector.extract_strided_slice %30 {offsets = [0, 0], sizes = [16, 32], strides = [1, 1]} : vector<16x80xf32> to vector<16x32xf32>
    %32 = vector.extract_strided_slice %30 {offsets = [0, 32], sizes = [16, 32], strides = [1, 1]} : vector<16x80xf32> to vector<16x32xf32>
    %33 = vector.extract_strided_slice %30 {offsets = [0, 64], sizes = [16, 8], strides = [1, 1]} : vector<16x80xf32> to vector<16x8xf32>
    %34 = vector.extract_strided_slice %30 {offsets = [0, 72], sizes = [16, 8], strides = [1, 1]} : vector<16x80xf32> to vector<16x8xf32>
    %35 = arith.mulf %25, %31 : vector<16x32xf32>
    %36 = arith.mulf %26, %32 : vector<16x32xf32>
    %37 = arith.addf %35, %36 : vector<16x32xf32>
    %38 = arith.mulf %27, %33 : vector<16x8xf32>
    %39 = arith.mulf %28, %34 : vector<16x8xf32>
    %40 = arith.addf %38, %39 : vector<16x8xf32>
    %41 = vector.extract_strided_slice %37 {offsets = [0, 0], sizes = [8, 8], strides = [1, 1]} : vector<16x32xf32> to vector<8x8xf32>
    %42 = vector.extract_strided_slice %37 {offsets = [0, 8], sizes = [8, 8], strides = [1, 1]} : vector<16x32xf32> to vector<8x8xf32>
    %43 = vector.extract_strided_slice %37 {offsets = [0, 16], sizes = [8, 8], strides = [1, 1]} : vector<16x32xf32> to vector<8x8xf32>
    %44 = vector.extract_strided_slice %37 {offsets = [0, 24], sizes = [8, 8], strides = [1, 1]} : vector<16x32xf32> to vector<8x8xf32>
    %45 = vector.extract_strided_slice %37 {offsets = [8, 0], sizes = [8, 8], strides = [1, 1]} : vector<16x32xf32> to vector<8x8xf32>
    %46 = vector.extract_strided_slice %37 {offsets = [8, 8], sizes = [8, 8], strides = [1, 1]} : vector<16x32xf32> to vector<8x8xf32>
    %47 = vector.extract_strided_slice %37 {offsets = [8, 16], sizes = [8, 8], strides = [1, 1]} : vector<16x32xf32> to vector<8x8xf32>
    %48 = vector.extract_strided_slice %37 {offsets = [8, 24], sizes = [8, 8], strides = [1, 1]} : vector<16x32xf32> to vector<8x8xf32>
    %49 = tpu.concatenate %41, %42, %43, %44, %45, %46, %47, %48 in 0 : vector<8x8xf32>, vector<8x8xf32>, vector<8x8xf32>, vector<8x8xf32>, vector<8x8xf32>, vector<8x8xf32>, vector<8x8xf32>, vector<8x8xf32> -> vector<64x8xf32>
    %cst_12 = arith.constant dense<0.000000e+00> : vector<64x16xf32>
    %50 = tpu.matmul %49, %40, %cst_12 {dimension_numbers = #tpu.dot_dimension_numbers<[1], [1], [0], [0], [0, 0, 1, 0], [], []>} : vector<64x8xf32>, vector<16x8xf32>, vector<64x16xf32> -> vector<64x16xf32>
    %cst_13 = arith.constant 0.353553385 : f32
    %51 = vector.broadcast %cst_13 : f32 to vector<64x16xf32>
    %52 = arith.mulf %50, %51 : vector<64x16xf32>
    %c0_14 = arith.constant 0 : index
    %c0_15 = arith.constant 0 : index
    %53 = vector.load %arg6[%c0_14, %c0_15] : memref<64x16xf32, #tpu.memory_space<vmem>>, vector<64x16xf32>
    %54 = arith.addf %52, %53 : vector<64x16xf32>
    %cst_16 = arith.constant dense<0xFF800000> : vector<64xf32>
    %55 = vector.multi_reduction <maximumf>, %54, %cst_16 [1] : vector<64x16xf32> to vector<64xf32>
    %56 = vector.shape_cast %55 : vector<64xf32> to vector<64x1xf32>
    %57 = vector.broadcast %56 : vector<64x1xf32> to vector<64x16xf32>
    %58 = arith.subf %54, %57 : vector<64x16xf32>
    %59 = math.exp %58 : vector<64x16xf32>
    %cst_17 = arith.constant dense<0.000000e+00> : vector<64xf32>
    %60 = vector.multi_reduction <add>, %59, %cst_17 [1] : vector<64x16xf32> to vector<64xf32>
    %61 = vector.shape_cast %60 : vector<64xf32> to vector<64x1xf32>
    %62 = tpu.reciprocal %61 {approx = true} : vector<64x1xf32> -> vector<64x1xf32>
    %63 = vector.broadcast %62 : vector<64x1xf32> to vector<64x16xf32>
    %64 = arith.mulf %59, %63 : vector<64x16xf32>
    %cst_18 = arith.constant dense<0.000000e+00> : vector<64x8xf32>
    %65 = tpu.matmul %64, %29, %cst_18 {dimension_numbers = #tpu.dot_dimension_numbers<[1], [0], [0], [1], [0, 0, 1, 1], [], []>} : vector<64x16xf32>, vector<16x8xf32>, vector<64x8xf32> -> vector<64x8xf32>
    %66 = vector.extract_strided_slice %65 {offsets = [0, 0], sizes = [8, 8], strides = [1, 1]} : vector<64x8xf32> to vector<8x8xf32>
    %67 = vector.extract_strided_slice %65 {offsets = [8, 0], sizes = [8, 8], strides = [1, 1]} : vector<64x8xf32> to vector<8x8xf32>
    %68 = vector.extract_strided_slice %65 {offsets = [16, 0], sizes = [8, 8], strides = [1, 1]} : vector<64x8xf32> to vector<8x8xf32>
    %69 = vector.extract_strided_slice %65 {offsets = [24, 0], sizes = [8, 8], strides = [1, 1]} : vector<64x8xf32> to vector<8x8xf32>
    %70 = tpu.concatenate %66, %67, %68, %69 in 1 : vector<8x8xf32>, vector<8x8xf32>, vector<8x8xf32>, vector<8x8xf32> -> vector<8x32xf32>
    %71 = vector.extract_strided_slice %65 {offsets = [32, 0], sizes = [8, 8], strides = [1, 1]} : vector<64x8xf32> to vector<8x8xf32>
    %72 = vector.extract_strided_slice %65 {offsets = [40, 0], sizes = [8, 8], strides = [1, 1]} : vector<64x8xf32> to vector<8x8xf32>
    %73 = vector.extract_strided_slice %65 {offsets = [48, 0], sizes = [8, 8], strides = [1, 1]} : vector<64x8xf32> to vector<8x8xf32>
    %74 = vector.extract_strided_slice %65 {offsets = [56, 0], sizes = [8, 8], strides = [1, 1]} : vector<64x8xf32> to vector<8x8xf32>
    %75 = tpu.concatenate %71, %72, %73, %74 in 1 : vector<8x8xf32>, vector<8x8xf32>, vector<8x8xf32>, vector<8x8xf32> -> vector<8x32xf32>
    %76 = tpu.concatenate %70, %75 in 0 : vector<8x32xf32>, vector<8x32xf32> -> vector<16x32xf32>
    %cst_19 = arith.constant 5.000000e-01 : f32
    %77 = vector.broadcast %cst_19 : f32 to vector<16x128xf32>
    %78 = arith.mulf %77, %24 : vector<16x128xf32>
    %cst_20 = arith.constant 0.707106769 : f32
    %79 = vector.broadcast %cst_20 : f32 to vector<16x128xf32>
    %80 = arith.mulf %24, %79 : vector<16x128xf32>
    %81 = math.absf %80 : vector<16x128xf32>
    %cst_21 = arith.constant 0.327591091 : f32
    %82 = vector.broadcast %cst_21 : f32 to vector<16x128xf32>
    %83 = arith.mulf %82, %81 : vector<16x128xf32>
    %cst_22 = arith.constant 1.000000e+00 : f32
    %84 = vector.broadcast %cst_22 : f32 to vector<16x128xf32>
    %85 = arith.addf %84, %83 : vector<16x128xf32>
    %cst_23 = arith.constant 1.000000e+00 : f32
    %86 = vector.broadcast %cst_23 : f32 to vector<16x128xf32>
    %87 = arith.divf %86, %85 : vector<16x128xf32>
    %cst_24 = arith.constant 1.06140542 : f32
    %88 = vector.broadcast %cst_24 : f32 to vector<16x128xf32>
    %89 = arith.mulf %88, %87 : vector<16x128xf32>
    %cst_25 = arith.constant -1.45315206 : f32
    %90 = vector.broadcast %cst_25 : f32 to vector<16x128xf32>
    %91 = arith.addf %89, %90 : vector<16x128xf32>
    %92 = arith.mulf %91, %87 : vector<16x128xf32>
    %cst_26 = arith.constant 1.42141378 : f32
    %93 = vector.broadcast %cst_26 : f32 to vector<16x128xf32>
    %94 = arith.addf %92, %93 : vector<16x128xf32>
    %95 = arith.mulf %94, %87 : vector<16x128xf32>
    %cst_27 = arith.constant -0.284496725 : f32
    %96 = vector.broadcast %cst_27 : f32 to vector<16x128xf32>
    %97 = arith.addf %95, %96 : vector<16x128xf32>
    %98 = arith.mulf %97, %87 : vector<16x128xf32>
    %cst_28 = arith.constant 0.254829586 : f32
    %99 = vector.broadcast %cst_28 : f32 to vector<16x128xf32>
    %100 = arith.addf %98, %99 : vector<16x128xf32>
    %101 = arith.mulf %100, %87 : vector<16x128xf32>
    %cst_29 = arith.constant 0.000000e+00 : f32
    %102 = vector.broadcast %cst_29 : f32 to vector<16x128xf32>
    %103 = arith.subf %102, %81 : vector<16x128xf32>
    %104 = arith.mulf %103, %81 : vector<16x128xf32>
    %105 = math.exp %104 : vector<16x128xf32>
    %106 = arith.mulf %101, %105 : vector<16x128xf32>
    %cst_30 = arith.constant 1.000000e+00 : f32
    %107 = vector.broadcast %cst_30 : f32 to vector<16x128xf32>
    %108 = arith.subf %107, %106 : vector<16x128xf32>
    %cst_31 = arith.constant 0.000000e+00 : f32
    %109 = vector.broadcast %cst_31 : f32 to vector<16x128xf32>
    %110 = arith.cmpf oge, %80, %109 : vector<16x128xf32>
    %cst_32 = arith.constant 0.000000e+00 : f32
    %111 = vector.broadcast %cst_32 : f32 to vector<16x128xf32>
    %112 = arith.subf %111, %108 : vector<16x128xf32>
    %113 = arith.select %110, %108, %112 : vector<16x128xi1>, vector<16x128xf32>
    %cst_33 = arith.constant 1.000000e+00 : f32
    %114 = vector.broadcast %cst_33 : f32 to vector<16x128xf32>
    %115 = arith.addf %114, %113 : vector<16x128xf32>
    %116 = arith.mulf %78, %115 : vector<16x128xf32>
    %117 = tpu.concatenate %116, %76 in 1 : vector<16x128xf32>, vector<16x32xf32> -> vector<16x160xf32>
    %c0_34 = arith.constant 0 : index
    %c0_35 = arith.constant 0 : index
    %118 = vector.load %arg4[%c0_34, %c0_35] : memref<160x32xf32, #tpu.memory_space<vmem>>, vector<160x32xf32>
    %cst_36 = arith.constant dense<0.000000e+00> : vector<16x32xf32>
    %119 = tpu.matmul %117, %118, %cst_36 {dimension_numbers = #tpu.dot_dimension_numbers<[1], [0], [0], [1], [0, 0, 1, 1], [], []>} : vector<16x160xf32>, vector<160x32xf32>, vector<16x32xf32> -> vector<16x32xf32>
    %120 = arith.addf %0, %119 : vector<16x32xf32>
    %c0_37 = arith.constant 0 : index
    %c0_38 = arith.constant 0 : index
    %121 = vector.load %arg7[%c0_37, %c0_38] : memref<16x32xf32, #tpu.memory_space<vmem>>, vector<16x32xf32>
    tpu.vector_store %arg7[%c0_37, %c0_38], %120 {strides = array<i32>} : memref<16x32xf32, #tpu.memory_space<vmem>>, vector<16x32xf32>,
    return
  }
  func.func @transform_0(%arg0: i32) -> (i32, i32) {
    %c0_i32 = arith.constant 0 : i32
    %c0_i32_0 = arith.constant 0 : i32
    %c0_i32_1 = arith.constant 0 : i32
    return %c0_i32, %c0_i32_0 : i32, i32
  }
  func.func @transform_1(%arg0: i32) -> (i32, i32) {
    %c0_i32 = arith.constant 0 : i32
    %c0_i32_0 = arith.constant 0 : i32
    %c0_i32_1 = arith.constant 0 : i32
    return %c0_i32, %c0_i32_0 : i32, i32
  }
  func.func @transform_2(%arg0: i32) -> (i32, i32) {
    %c0_i32 = arith.constant 0 : i32
    %c0_i32_0 = arith.constant 0 : i32
    %c0_i32_1 = arith.constant 0 : i32
    return %c0_i32, %c0_i32_0 : i32, i32
  }
  func.func @transform_3(%arg0: i32) -> (i32, i32) {
    %c0_i32 = arith.constant 0 : i32
    %c0_i32_0 = arith.constant 0 : i32
    %c0_i32_1 = arith.constant 0 : i32
    return %c0_i32, %c0_i32_0 : i32, i32
  }
  func.func @transform_4(%arg0: i32) -> (i32, i32) {
    %c0_i32 = arith.constant 0 : i32
    %c0_i32_0 = arith.constant 0 : i32
    %c0_i32_1 = arith.constant 0 : i32
    return %c0_i32, %c0_i32_0 : i32, i32
  }
  func.func @transform_5(%arg0: i32) -> (i32, i32) {
    %c0_i32 = arith.constant 0 : i32
    %c0_i32_0 = arith.constant 0 : i32
    %c0_i32_1 = arith.constant 0 : i32
    return %c0_i32, %c0_i32_0 : i32, i32
  }
  func.func @transform_6(%arg0: i32) -> (i32, i32) {
    %c0_i32 = arith.constant 0 : i32
    %c0_i32_0 = arith.constant 0 : i32
    %c0_i32_1 = arith.constant 0 : i32
    return %c0_i32, %c0_i32_0 : i32, i32
  }
}

</mosaic_0001>

<bundles_post_ra>
// kernel: tpu_custom_call.1
= control target key start
LH: loop header
LB: loop body
LE: loop exit
PB: predicated region body
PF: predicated region fallthrough
CT: control target
= control target key end

     0   :  { %vm26_vm0 = vcmask 261120   ;;  %s1221_s0 = inlined_call_operand.vmem [shape: f32[16,32], index: 0, kind: input, shape index: {}]   ;;  %s1222_s1 = inlined_call_operand.vmem [shape: f32[32,216], index: 1, kind: input, shape index: {}]   ;;  %s1223_s2 = inlined_call_operand.vmem [shape: f32[1,216], index: 2, kind: input, shape index: {}]   ;;  %s1224_s3 = inlined_call_operand.vmem [shape: f32[160,32], index: 3, kind: input, shape index: {}]   ;;  %s1225_s4 = inlined_call_operand.vmem [shape: f32[16,80], index: 4, kind: input, shape index: {}]   ;;  %s1226_s5 = inlined_call_operand.vmem [shape: f32[64,16], index: 5, kind: input, shape index: {}]   ;;  %s1227_s6 = inlined_call_operand.hbm [shape: f32[16,32], index: 6, kind: output, shape index: {}]  }
   0x1   :  { %v983_v0 = vld [vmem:[%s1221_s0] sm:$0xff]  ;;  %v988_v1 = vld [vmem:[%s1221_s0 + $0x8] sm:$0xff] }
   0x2   :  { %11 = vsyncpa [#allocation3], 0  ;;  %v27_v2 = vsel %vm26_vm0, %v983_v0, 0.0  ;;  %v30_v3 = vsel %vm26_vm0, %v988_v1, 0.0  ;;  %v61_v14 = vld [vmem:[%s1222_s1 + $0x38] sm:$0xff]  ;;  %v60_v15 = vld [vmem:[%s1222_s1 + $0x30] sm:$0xff]  ;;  %v64_v33 = vlaneseq }
   0x3   :  { %28 = vadd.xlane.f32.xlu0 %v27_v2  ;;  %v59_v16 = vld [vmem:[%s1222_s1 + $0x28] sm:$0xff]  ;;  %104 = vmatprep.subr.mxu0 %v61_v14  ;;  %v58_v17 = vld [vmem:[%s1222_s1 + $0x20] sm:$0xff]  ;;  %v933_v18 = vmov 0.0   ;;  %v57_v19 = vld [vmem:[%s1222_s1 + $0x18] sm:$0xff]  ;;  %s935_s21 = smov 96   ;;  %s936_s22 = smov 64  }
   0x4   :  { %144 = vmatprep.mubr.f32.mxu0 %v933_v18  ;;  %105 = vmatpush1.msra.mxu0 %v60_v15  ;;  %v56_v20 = vld [vmem:[%s1222_s1 + $0x10] sm:$0xff]  ;;  %v55_v21 = vld [vmem:[%s1222_s1 + $0x8] sm:$0xff]  ;;  %v54_v22 = vld [vmem:[%s1222_s1] sm:$0xff]  ;;  %v1027_v34 = vshrl.u32 %v64_v33, 7  ;;  %vm199_vm1 = vcmask 64512   ;;  %s938_s23 = smov 104  }
   0x5   :  { %686 = vmatprep.subr.mxu1 %v933_v18  ;;  %106 = vmatprep.subr.mxu0 %v59_v16  ;;  %v1033_v36 = vld [vmem:[%s1223_s2] sm:$0x3]  ;;  %v158_v45 = vld [vmem:[%s1225_s4 + $0x8] sm:$0xff]  ;;  %s934_s2 = smov 120   ;;  %vm349_vm2 = vcmask 130048   ;;  %s941_s24 = smov 24  }
   0x6   :  { %107 = vmatpush1.msra.mxu0 %v58_v17  ;;  %v70_v35 = vsub.s32 1, %v1027_v34  ;;  %v157_v40 = vld [vmem:[%s1225_s4] sm:$0xff]  ;;  %s937_s4 = smov 112   ;;  %s942_s0 = smov 16   ;;  %vm589_vm4 = vcmask 195584  }
   0x7   :  { %31 = vadd.xlane.f32.xlu0 %v30_v3  ;;  %108 = vmatprep.subr.mxu0 %v57_v19  ;;  %v334_v3 = vld [vmem:[%s1226_s5 + $0x8] sm:$0xff] }
   0x8   :  { %109 = vmatpush1.msra.mxu0 %v56_v20  ;;  %v71_v37 = vrot.slane %v1033_v36, %v70_v35  ;;  %v338_v20 = vld [vmem:[%s1226_s5 + $0x28] sm:$0xff] }
   0x9   :  { %110 = vmatprep.subr.mxu0 %v55_v21  ;;  %v335_v21 = vld [vmem:[%s1226_s5 + $0x10] sm:$0xff] }
   0xa   :  { %111 = vmatpush1.msra.mxu0 %v54_v22 }
  0x8c   :  { %v29_v4 = vpop.xlane.xlu0 %28 }
  0x8d   :  { %v34_v5 = vmul.f32 0.03125, %v29_v4 }
  0x8f   :  { %v36_v6 = vsub.f32 %v983_v0, %v34_v5 }
  0x90   :  { %v32_v7 = vpop.xlane.xlu0 %31 }
  0x91   :  { %v35_v8 = vmul.f32 0.03125, %v32_v7  ;;  %v38_v9 = vmul.f32 %v36_v6, %v36_v6 }
  0x93   :  { %v37_v10 = vsub.f32 %v988_v1, %v35_v8  ;;  %v40_v11 = vsel %vm26_vm0, %v38_v9, 0.0 }
  0x94   :  { %41 = vadd.xlane.f32.xlu1 %v40_v11 }
  0x95   :  { %v39_v12 = vmul.f32 %v37_v10, %v37_v10 }
  0x97   :  { %v43_v13 = vsel %vm26_vm0, %v39_v12, 0.0 }
  0x98   :  { %44 = vadd.xlane.f32.xlu1 %v43_v13 }
 0x11d   :  { %v42_v23 = vpop.xlane.xlu1 %41 }
 0x11e   :  { %v46_v24 = vmul.f32 0.03125, %v42_v23 }
 0x120   :  { %v48_v25 = vadd.f32 1e-05, %v46_v24 }
 0x121   :  { %v45_v26 = vpop.xlane.xlu1 %44 }
 0x122   :  { %867 = vrsqrt.f32 %v48_v25  ;;  %v47_v27 = vmul.f32 0.03125, %v45_v26 }
 0x124   :  { %v49_v28 = vadd.f32 1e-05, %v47_v27 }
 0x126   :  { %869 = vrsqrt.f32 %v49_v28 }
 0x12f   :  { %v868_v29 = vpop.eup %867 }
 0x130   :  { %v52_v30 = vmul.f32 %v868_v29, %v36_v6  ;;  %v333_v6 = vld [vmem:[%s1226_s5] sm:$0xff]  ;;  %v340_v29 = vld [vmem:[%s1226_s5 + $0x38] sm:$0xff] }
 0x132   :  { %781 = vmatmul.mubr.msk.f32.vlgmr.msra.gmra.mxu0 %vm26_vm0, %v52_v30  ;;  %v337_v30 = vld [vmem:[%s1226_s5 + $0x20] sm:$0xff] }
 0x133   :  { %v870_v31 = vpop.eup %869  ;;  %150 = vmatprep.mubr.f32.mxu0 %v933_v18 }
 0x134   :  { %v53_v32 = vmul.f32 %v870_v31, %v37_v10  ;;  %v336_v10 = vld [vmem:[%s1226_s5 + $0x18] sm:$0xff] }
 0x136   :  { %782 = vmatmul.mubr.msk.f32.gmra.mxu0 %vm26_vm0, %v53_v32 }
 0x1f2   :  { %v1036_v38 = vpop.f32.mrf.mxu0 }
 0x1f4   :  { %v148_v39 = vpop.f32.mrf.mxu0 }
 0x1f5   :  { %v1041_v41 = vadd.f32 %v148_v39, %v71_v37 }
 0x1f6   :  { %v1043_v42 = vpop.f32.mrf.mxu0 }
 0x1f7   :  { %v159_v43 = vmul.f32 %v157_v40, %v1041_v41 }
 0x1f8   :  { %v154_v44 = vpop.f32.mrf.mxu0 }
 0x1f9   :  { %171 = vrot.lane.b32.xlu1 %v159_v43, %s934_s2  ;;  %v1049_v46 = vadd.f32 %v154_v44, %v71_v37 }
 0x1fb   :  { %v160_v47 = vmul.f32 %v158_v45, %v1049_v46 }
 0x1fd   :  { %163 = vrot.lane.b32.xlu1 %v159_v43, %s935_s21  ;;  %173 = vrot.lane.b32.xlu0 %v160_v47, %s934_s2 }
 0x201   :  { %165 = vrot.lane.b32.xlu1 %v160_v47, %s935_s21 }
 0x26b   :  { %v172_v48 = vpop.permute.xlu1 %171 }
 0x26c   :  { %v177_v49 = vadd.f32 %v172_v48, %v159_v43 }
 0x26e   :  { %195 = vrot.lane.b32.xlu1 %v177_v49, %s936_s22 }
 0x26f   :  { %v164_v50 = vpop.permute.xlu1 %163  ;;  %v174_v51 = vpop.permute.xlu0 %173 }
 0x270   :  { %v169_v52 = vadd.f32 %v164_v50, %v159_v43  ;;  %v178_v53 = vadd.f32 %v174_v51, %v160_v47  ;;  %v339_v43 = vld [vmem:[%s1226_s5 + $0x30] sm:$0xff]  ;;  %s939_s5 = smov 48  }
 0x272   :  { %182 = vrot.lane.b32.xlu1 %v169_v52, %s937_s4  ;;  %827 = vmatprep.mubr.msk.f32.mxu0 %vm199_vm1, %v169_v52 }
 0x273   :  { %197 = vrot.lane.b32.xlu0 %v178_v53, %s936_s22  ;;  %v166_v54 = vpop.permute.xlu1 %165 }
 0x274   :  { %v170_v55 = vadd.f32 %v166_v54, %v160_v47 }
 0x276   :  { %187 = vrot.lane.b32.xlu1 %v170_v55, %s934_s2 }
 0x277   :  { %180 = vrot.lane.b32.xlu0 %v169_v52, %s934_s2 }
 0x27a   :  { %191 = vrot.lane.b32.xlu1 %v170_v55, %s938_s23 }
 0x27b   :  { %184 = vrot.lane.b32.xlu0 %v169_v52, %s938_s23  ;;  %s940_s23 = smov 8  }
 0x27f   :  { %189 = vrot.lane.b32.xlu0 %v170_v55, %s937_s4 }
 0x2e0   :  { %v196_v57 = vpop.permute.xlu1 %195 }
 0x2e4   :  { %v183_v59 = vpop.permute.xlu1 %182 }
 0x2e5   :  { %v198_v56 = vpop.permute.xlu0 %197 }
 0x2e6   :  { %823 = vmatprep.subr.msk.mxu0 %vm199_vm1, %v198_v56 }
 0x2e7   :  { %824 = vmatpush3.xpose.msk.msra.mxu0 %vm199_vm1, %v198_v56 }
 0x2e8   :  { %825 = vmatprep.subr.msk.mxu0 %vm199_vm1, %v196_v57  ;;  %v188_v61 = vpop.permute.xlu1 %187 }
 0x2e9   :  { %v181_v58 = vpop.permute.xlu0 %180 }
 0x2eb   :  { %826 = vmatpush3.xpose.msk.msra.mxu0 %vm199_vm1, %v196_v57 }
 0x2ec   :  { %v192_v63 = vpop.permute.xlu1 %191 }
 0x2ed   :  { %v185_v60 = vpop.permute.xlu0 %184 }
 0x2ee   :  { %828 = vmatmul.mubr.msk.f32.vlgmr.msra.gmra.mxu0 %vm199_vm1, %v181_v58 }
 0x2ef   :  { %830 = vmatprep.mubr.msk.f32.mxu0 %vm199_vm1, %v183_v59 }
 0x2f1   :  { %v190_v62 = vpop.permute.xlu0 %189 }
 0x2f2   :  { %831 = vmatmul.mubr.msk.f32.gmra.mxu0 %vm199_vm1, %v185_v60 }
 0x2f3   :  { %833 = vmatprep.mubr.msk.f32.mxu0 %vm199_vm1, %v170_v55 }
 0x2f6   :  { %834 = vmatmul.mubr.msk.f32.gmra.mxu0 %vm199_vm1, %v188_v61 }
 0x2f7   :  { %836 = vmatprep.mubr.msk.f32.mxu0 %vm199_vm1, %v190_v62 }
 0x2fa   :  { %837 = vmatmul.mubr.msk.f32.gmra.mxu0 %vm199_vm1, %v192_v63 }
 0x3ae   :  { %v829_v2 = vpop.f32.mrf.mxu0 }
 0x3af   :  { %v326_v4 = vmul.f32 0.35355338, %v829_v2 }
 0x3b0   :  { %v286_v5 = vpop.f32.mrf.mxu0 }
 0x3b1   :  { %v325_v7 = vmul.f32 0.35355338, %v286_v5  ;;  %v342_v8 = vadd.f32 %v334_v3, %v326_v4 }
 0x3b2   :  { %v832_v9 = vpop.f32.mrf.mxu0 }
 0x3b3   :  { %v328_v11 = vmul.f32 0.35355338, %v832_v9  ;;  %v353_v12 = vsel %vm349_vm2, %v342_v8, -inf  ;;  %v341_v13 = vadd.f32 %v333_v6, %v325_v7 }
 0x3b4   :  { %354 = vmax.xlane.f32.xlu1 %v353_v12  ;;  %v296_v14 = vpop.f32.mrf.mxu0 }
 0x3b5   :  { %v327_v15 = vmul.f32 0.35355338, %v296_v14  ;;  %v350_v16 = vsel %vm349_vm2, %v341_v13, -inf  ;;  %v344_v17 = vadd.f32 %v336_v10, %v328_v11 }
 0x3b6   :  { %351 = vmax.xlane.f32.xlu0 %v350_v16  ;;  %v835_v19 = vpop.f32.mrf.mxu0 }
 0x3b7   :  { %v330_v22 = vmul.f32 0.35355338, %v835_v19  ;;  %v359_v25 = vsel %vm349_vm2, %v344_v17, -inf  ;;  %v343_v27 = vadd.f32 %v335_v21, %v327_v15 }
 0x3b8   :  { %v306_v23 = vpop.f32.mrf.mxu0 }
 0x3b9   :  { %v329_v24 = vmul.f32 0.35355338, %v306_v23  ;;  %v346_v26 = vadd.f32 %v338_v20, %v330_v22  ;;  %v356_v37 = vsel %vm349_vm2, %v343_v27, -inf }
 0x3ba   :  { %360 = vmax.xlane.f32.xlu0 %v359_v25  ;;  %v838_v28 = vpop.f32.mrf.mxu0 }
 0x3bb   :  { %v332_v31 = vmul.f32 0.35355338, %v838_v28  ;;  %v365_v32 = vsel %vm349_vm2, %v346_v26, -inf  ;;  %v345_v40 = vadd.f32 %v337_v30, %v329_v24 }
 0x3bc   :  { %366 = vmax.xlane.f32.xlu1 %v365_v32  ;;  %v316_v33 = vpop.f32.mrf.mxu0 }
 0x3bd   :  { %v331_v35 = vmul.f32 0.35355338, %v316_v33  ;;  %v348_v39 = vadd.f32 %v340_v29, %v332_v31  ;;  %v362_v45 = vsel %vm349_vm2, %v345_v40, -inf }
 0x3be   :  { %357 = vmax.xlane.f32.xlu0 %v356_v37 }
 0x3bf   :  { %v371_v44 = vsel %vm349_vm2, %v348_v39, -inf  ;;  %v347_v47 = vadd.f32 %v339_v43, %v331_v35 }
 0x3c0   :  { %372 = vmax.xlane.f32.xlu1 %v371_v44 }
 0x3c1   :  { %v368_v48 = vsel %vm349_vm2, %v347_v47, -inf }
 0x3c2   :  { %363 = vmax.xlane.f32.xlu0 %v362_v45 }
 0x3c6   :  { %369 = vmax.xlane.f32.xlu0 %v368_v48 }
 0x43d   :  { %v355_v49 = vpop.xlane.xlu1 %354 }
 0x43e   :  { %v375_v50 = vsub.f32 %v342_v8, %v355_v49 }
 0x43f   :  { %v352_v51 = vpop.xlane.xlu0 %351 }
 0x440   :  { %v384_v52 = vmul.f32 1.442695, %v375_v50  ;;  %v374_v53 = vsub.f32 %v341_v13, %v352_v51 }
 0x442   :  { %871 = vpow2.f32 %v384_v52  ;;  %v382_v54 = vmul.f32 1.442695, %v374_v53 }
 0x443   :  { %v361_v55 = vpop.xlane.xlu0 %360 }
 0x444   :  { %873 = vpow2.f32 %v382_v54  ;;  %v377_v56 = vsub.f32 %v344_v17, %v361_v55 }
 0x445   :  { %v367_v57 = vpop.xlane.xlu1 %366 }
 0x446   :  { %v388_v58 = vmul.f32 1.442695, %v377_v56  ;;  %v379_v59 = vsub.f32 %v346_v26, %v367_v57 }
 0x447   :  { %v358_v60 = vpop.xlane.xlu0 %357 }
 0x448   :  { %875 = vpow2.f32 %v388_v58  ;;  %v392_v61 = vmul.f32 1.442695, %v379_v59  ;;  %v376_v62 = vsub.f32 %v343_v27, %v358_v60  ;;  %v675_v58 = vld [vmem:[%s1224_s3 + $0x78] sm:$0xff]  ;;  %v674_v59 = vld [vmem:[%s1224_s3 + $0x70] sm:$0xff]  ;;  %v673_v60 = vld [vmem:[%s1224_s3 + $0x68] sm:$0xff] }
 0x449   :  { %v373_v63 = vpop.xlane.xlu1 %372  ;;  %687 = vmatpush1.msra.mxu1 %v675_v58 }
 0x44a   :  { %877 = vpow2.f32 %v392_v61  ;;  %v386_v2 = vmul.f32 1.442695, %v376_v62  ;;  %v381_v3 = vsub.f32 %v348_v39, %v373_v63  ;;  %688 = vmatprep.subr.mxu1 %v933_v18  ;;  %v672_v61 = vld [vmem:[%s1224_s3 + $0x60] sm:$0xff]  ;;  %v671_v62 = vld [vmem:[%s1224_s3 + $0x58] sm:$0xff]  ;;  %v670_v63 = vld [vmem:[%s1224_s3 + $0x50] sm:$0xff] }
 0x44b   :  { %v364_v4 = vpop.xlane.xlu0 %363  ;;  %689 = vmatpush1.msra.mxu1 %v674_v59 }
 0x44c   :  { %879 = vpow2.f32 %v386_v2  ;;  %v396_v5 = vmul.f32 1.442695, %v381_v3  ;;  %v378_v6 = vsub.f32 %v345_v40, %v364_v4  ;;  %690 = vmatprep.subr.mxu1 %v933_v18  ;;  %v669_v2 = vld [vmem:[%s1224_s3 + $0x48] sm:$0xff]  ;;  %v668_v3 = vld [vmem:[%s1224_s3 + $0x40] sm:$0xff]  ;;  %v667_v4 = vld [vmem:[%s1224_s3 + $0x38] sm:$0xff] }
 0x44d   :  { %691 = vmatpush1.msra.mxu1 %v673_v60 }
 0x44e   :  { %881 = vpow2.f32 %v396_v5  ;;  %v390_v7 = vmul.f32 1.442695, %v378_v6  ;;  %692 = vmatprep.subr.mxu1 %v933_v18  ;;  %v666_v5 = vld [vmem:[%s1224_s3 + $0x30] sm:$0xff]  ;;  %v665_v6 = vld [vmem:[%s1224_s3 + $0x28] sm:$0xff] }
 0x44f   :  { %v872_v8 = vpop.eup %871  ;;  %v370_v9 = vpop.xlane.xlu0 %369  ;;  %693 = vmatpush1.msra.mxu1 %v672_v61 }
 0x450   :  { %883 = vpow2.f32 %v390_v7  ;;  %v380_v10 = vsub.f32 %v347_v47, %v370_v9  ;;  %v401_v11 = vsel %vm349_vm2, %v872_v8, 0.0  ;;  %694 = vmatprep.subr.mxu1 %v933_v18  ;;  %v664_v7 = vld [vmem:[%s1224_s3 + $0x20] sm:$0xff]  ;;  %v662_v9 = vld [vmem:[%s1224_s3 + $0x10] sm:$0xff] }
 0x451   :  { %v874_v12 = vpop.eup %873  ;;  %402 = vadd.xlane.f32.xlu1 %v401_v11  ;;  %695 = vmatpush1.msra.mxu1 %v671_v62  ;;  %v660_v11 = vld [vmem:[%s1224_s3] sm:$0xff] }
 0x452   :  { %v394_v13 = vmul.f32 1.442695, %v380_v10  ;;  %v398_v14 = vsel %vm349_vm2, %v874_v12, 0.0  ;;  %696 = vmatprep.subr.mxu1 %v933_v18  ;;  %v661_v10 = vld [vmem:[%s1224_s3 + $0x8] sm:$0xff] }
 0x453   :  { %399 = vadd.xlane.f32.xlu0 %v398_v14  ;;  %697 = vmatpush1.msra.mxu1 %v670_v63  ;;  %v677_v14 = vld [vmem:[%s1224_s3 + $0x88] sm:$0xff] }
 0x454   :  { %885 = vpow2.f32 %v394_v13  ;;  %698 = vmatprep.subr.mxu1 %v933_v18  ;;  %v678_v13 = vld [vmem:[%s1224_s3 + $0x90] sm:$0xff] }
 0x455   :  { %v876_v15 = vpop.eup %875  ;;  %699 = vmatpush1.msra.mxu1 %v669_v2 }
 0x456   :  { %v407_v16 = vsel %vm349_vm2, %v876_v15, 0.0  ;;  %700 = vmatprep.subr.mxu1 %v933_v18 }
 0x457   :  { %v878_v17 = vpop.eup %877  ;;  %408 = vadd.xlane.f32.xlu1 %v407_v16  ;;  %701 = vmatpush1.msra.mxu1 %v668_v3 }
 0x458   :  { %v413_v21 = vsel %vm349_vm2, %v878_v17, 0.0  ;;  %702 = vmatprep.subr.mxu1 %v933_v18 }
 0x459   :  { %v880_v19 = vpop.eup %879  ;;  %703 = vmatpush1.msra.mxu1 %v667_v4 }
 0x45a   :  { %v404_v20 = vsel %vm349_vm2, %v880_v19, 0.0  ;;  %704 = vmatprep.subr.mxu1 %v933_v18 }
 0x45b   :  { %v882_v22 = vpop.eup %881  ;;  %405 = vadd.xlane.f32.xlu0 %v404_v20  ;;  %414 = vadd.xlane.f32.xlu1 %v413_v21 }
 0x45c   :  { %v419_v25 = vsel %vm349_vm2, %v882_v22, 0.0  ;;  %705 = vmatpush1.msra.mxu1 %v666_v5 }
 0x45d   :  { %v884_v23 = vpop.eup %883  ;;  %706 = vmatprep.subr.mxu1 %v933_v18 }
 0x45e   :  { %v410_v24 = vsel %vm349_vm2, %v884_v23, 0.0  ;;  %707 = vmatpush1.msra.mxu1 %v665_v6 }
 0x45f   :  { %411 = vadd.xlane.f32.xlu0 %v410_v24  ;;  %420 = vadd.xlane.f32.xlu1 %v419_v25  ;;  %v66_v24 = vsub.s32 0, %v1027_v34 }
 0x460   :  { %708 = vmatprep.subr.mxu1 %v933_v18 }
 0x461   :  { %v886_v26 = vpop.eup %885  ;;  %709 = vmatpush1.msra.mxu1 %v664_v7  ;;  %v67_v25 = vrot.slane %v1033_v36, %v66_v24 }
 0x462   :  { %v416_v27 = vsel %vm349_vm2, %v886_v26, 0.0  ;;  %710 = vmatprep.subr.mxu1 %v933_v18 }
 0x463   :  { %417 = vadd.xlane.f32.xlu0 %v416_v27 }
 0x470   :  { %440 = vrot.lane.b32.xlu1 %v1041_v41, %s939_s5 }
 0x479   :  { %442 = vrot.lane.b32.xlu0 %v1049_v46, %s939_s5 }
 0x4da   :  { %v403_v28 = vpop.xlane.xlu1 %402 }
 0x4dc   :  { %v400_v29 = vpop.xlane.xlu0 %399 }
 0x4dd   :  { %887 = vrcp.f32 %v400_v29  ;;  %v153_v29 = vadd.f32 %v1043_v42, %v67_v25 }
 0x4de   :  { %889 = vrcp.f32 %v403_v28 }
 0x4e0   :  { %v409_v30 = vpop.xlane.xlu1 %408 }
 0x4e4   :  { %v406_v31 = vpop.xlane.xlu0 %405  ;;  %v415_v32 = vpop.xlane.xlu1 %414 }
 0x4e5   :  { %891 = vrcp.f32 %v406_v31  ;;  %v609_v31 = vmul.f32 0.70710677, %v153_v29 }
 0x4e6   :  { %893 = vrcp.f32 %v409_v30 }
 0x4e7   :  { %vm651_vm5 = vcmp.ge.f32.partialorder %v609_v31, 0.0 }
 0x4e8   :  { %v412_v33 = vpop.xlane.xlu0 %411  ;;  %v421_v39 = vpop.xlane.xlu1 %420 }
 0x4e9   :  { %895 = vrcp.f32 %v412_v33  ;;  %v611_v33 = vand.u32 2147483647, %v609_v31 }
 0x4ea   :  { %v888_v35 = vpop.eup %887  ;;  %897 = vrcp.f32 %v415_v32 }
 0x4eb   :  { %v430_v37 = vmul.f32 %v888_v35, %v874_v12  ;;  %v890_v41 = vpop.eup %889  ;;  %v679_v12 = vld [vmem:[%s1224_s3 + $0x98] sm:$0xff]  ;;  %v613_v35 = vmul.f32 0.3275911, %v611_v33 }
 0x4ec   :  { %v418_v40 = vpop.xlane.xlu0 %417  ;;  %v441_v44 = vpop.permute.xlu1 %440  ;;  %v431_v45 = vmul.f32 %v890_v41, %v872_v8  ;;  %v663_v8 = vld [vmem:[%s1224_s3 + $0x18] sm:$0xff] }
 0x4ed   :  { %899 = vrcp.f32 %v418_v40  ;;  %843 = vmatprep.mubr.msk.f32.mxu0 %vm349_vm2, %v430_v37  ;;  %711 = vmatpush1.msra.mxu1 %v663_v8  ;;  %v615_v37 = vadd.f32 1.0, %v613_v35 }
 0x4ee   :  { %901 = vrcp.f32 %v421_v39  ;;  %712 = vmatprep.subr.mxu1 %v933_v18 }
 0x4ef   :  { %713 = vmatpush1.msra.mxu1 %v662_v9 }
 0x4f0   :  { %v443_v46 = vpop.permute.xlu0 %442  ;;  %714 = vmatprep.subr.mxu1 %v933_v18 }
 0x4f1   :  { %839 = vmatprep.subr.mxu0 %v443_v46  ;;  %715 = vmatpush1.msra.mxu1 %v661_v10 }
 0x4f2   :  { %v892_v43 = vpop.eup %891  ;;  %840 = vmatpush3.msra.mxu0 %v443_v46  ;;  %716 = vmatprep.subr.mxu1 %v933_v18 }
 0x4f3   :  { %841 = vmatprep.subr.mxu0 %v441_v44  ;;  %v432_v47 = vmul.f32 %v892_v43, %v880_v19  ;;  %v894_v48 = vpop.eup %893  ;;  %717 = vmatpush1.msra.mxu1 %v660_v11 }
 0x4f4   :  { %842 = vmatpush3.msra.mxu0 %v441_v44  ;;  %v433_v50 = vmul.f32 %v894_v48, %v876_v15  ;;  %742 = vmatprep.subr.mxu1 %v933_v18  ;;  %v676_v15 = vld [vmem:[%s1224_s3 + $0x80] sm:$0xff]  ;;  %s943_s3 = smov [#allocation2]  }
 0x4f5   :  { %844 = vmatmul.mubr.msk.f32.vlgmr.msra.gmra.mxu0 %vm349_vm2, %v431_v45  ;;  %743 = vmatpush2.msra.mxu1 %v679_v12  ;;  %s770_s25 = sshll.u32 %s943_s3, 4  ;;  %s771_s25 = int_to_ptr.vmem [resolvable:$true] %s770_s25 }
 0x4f6   :  { %v896_v49 = vpop.eup %895  ;;  %846 = vmatprep.mubr.msk.f32.mxu0 %vm349_vm2, %v432_v47  ;;  %744 = vmatprep.subr.mxu1 %v933_v18  ;;  %s911_s26 = scalar_lea.vmem %s771_s25, 256  ;;  %p916_p1 = scmp.lt.s32.totalorder %s771_s25, %s771_s25 }
 0x4f7   :  { %v434_v51 = vmul.f32 %v896_v49, %v884_v23  ;;  %v898_v52 = vpop.eup %897  ;;  %745 = vmatpush2.msra.mxu1 %v678_v13  ;;  %v639_v49 = vsub.f32 0.0, %v611_v33  ;;  %p912_p0 = scmp.ne.s32.totalorder %s771_s25, %s911_s26  ;;  %p917_p2 = scmp.lt.s32.totalorder %s911_s26, %s911_s26 }
 0x4f8   :  { %v435_v54 = vmul.f32 %v898_v52, %v878_v17  ;;  %746 = vmatprep.subr.mxu1 %v933_v18 }
 0x4f9   :  { %847 = vmatmul.mubr.msk.f32.gmra.mxu0 %vm349_vm2, %v433_v50  ;;  %747 = vmatpush2.msra.mxu1 %v677_v14  ;;  %v641_v52 = vmul.f32 %v639_v49, %v611_v33  ;;  %p918_p3 = por %p917_p2, %p916_p1 }
 0x4fa   :  { %v900_v53 = vpop.eup %899  ;;  %849 = vmatprep.mubr.msk.f32.mxu0 %vm349_vm2, %v434_v51  ;;  %748 = vmatprep.subr.mxu1 %v933_v18 }
 0x4fb   :  { %v436_v55 = vmul.f32 %v900_v53, %v886_v26  ;;  %v902_v56 = vpop.eup %901  ;;  %749 = vmatpush2.msra.mxu1 %v676_v15  ;;  %v147_v26 = vadd.f32 %v1036_v38, %v67_v25  ;;  %p919_p4 = pnand %p918_p3, %p912_p0 }
 0x4fc   :  { %v437_v57 = vmul.f32 %v902_v56, %v882_v22 }
 0x4fd   :  { %850 = vmatmul.mubr.msk.f32.gmra.mxu0 %vm349_vm2, %v435_v54  ;;  %v608_v27 = vmul.f32 0.70710677, %v147_v26  ;;  %v606_v11 = vmul.f32 0.5, %v147_v26 }
 0x4fe   :  { %852 = vmatprep.mubr.msk.f32.mxu0 %vm349_vm2, %v436_v55  ;;  %v644_v55 = vmul.f32 1.442695, %v641_v52 }
 0x4ff   :  { %v610_v28 = vand.u32 2147483647, %v608_v27  ;;  %vm650_vm3 = vcmp.ge.f32.partialorder %v608_v27, 0.0 }
 0x501   :  { %853 = vmatmul.mubr.msk.f32.gmra.mxu0 %vm349_vm2, %v437_v57  ;;  %v612_v30 = vmul.f32 0.3275911, %v610_v28  ;;  %v638_v43 = vsub.f32 0.0, %v610_v28 }
 0x503   :  { %v614_v32 = vadd.f32 1.0, %v612_v30  ;;  %v640_v45 = vmul.f32 %v638_v43, %v610_v28 }
 0x505   :  { %903 = vrcp.f32 %v614_v32  ;;  %v642_v48 = vmul.f32 1.442695, %v640_v45 }
 0x506   :  { %905 = vrcp.f32 %v615_v37 }
 0x507   :  { %907 = vpow2.f32 %v642_v48 }
 0x508   :  { %909 = vpow2.f32 %v644_v55 }
 0x512   :  { %v904_v39 = vpop.eup %903 }
 0x513   :  { %v620_v40 = vmul.f32 1.0614054, %v904_v39  ;;  %v906_v34 = vpop.eup %905 }
 0x514   :  { %v621_v36 = vmul.f32 1.0614054, %v906_v34  ;;  %v908_v60 = vpop.eup %907 }
 0x515   :  { %v622_v41 = vadd.f32 -1.4531521, %v620_v40  ;;  %v910_v3 = vpop.eup %909 }
 0x516   :  { %v623_v44 = vadd.f32 -1.4531521, %v621_v36 }
 0x517   :  { %v624_v46 = vmul.f32 %v904_v39, %v622_v41 }
 0x518   :  { %v625_v42 = vmul.f32 %v906_v34, %v623_v44 }
 0x519   :  { %v626_v38 = vadd.f32 1.4214138, %v624_v46 }
 0x51a   :  { %v627_v51 = vadd.f32 1.4214138, %v625_v42 }
 0x51b   :  { %v628_v47 = vmul.f32 %v904_v39, %v626_v38 }
 0x51c   :  { %v629_v54 = vmul.f32 %v906_v34, %v627_v51 }
 0x51d   :  { %v630_v50 = vadd.f32 -0.28449672, %v628_v47 }
 0x51e   :  { %v631_v57 = vadd.f32 -0.28449672, %v629_v54 }
 0x51f   :  { %v632_v53 = vmul.f32 %v904_v39, %v630_v50 }
 0x520   :  { %v633_v59 = vmul.f32 %v906_v34, %v631_v57 }
 0x521   :  { %v634_v56 = vadd.f32 0.2548296, %v632_v53 }
 0x522   :  { %v635_v62 = vadd.f32 0.2548296, %v633_v59 }
 0x523   :  { %v636_v58 = vmul.f32 %v904_v39, %v634_v56 }
 0x524   :  { %v637_v2 = vmul.f32 %v906_v34, %v635_v62 }
 0x525   :  { %v646_v61 = vmul.f32 %v908_v60, %v636_v58 }
 0x526   :  { %v647_v5 = vmul.f32 %v910_v3, %v637_v2 }
 0x527   :  { %v648_v63 = vsub.f32 1.0, %v646_v61 }
 0x528   :  { %v649_v7 = vsub.f32 1.0, %v647_v5 }
 0x529   :  { %v652_v4 = vsub.f32 0.0, %v648_v63 }
 0x52a   :  { %v653_v10 = vsub.f32 0.0, %v649_v7 }
 0x52b   :  { %v654_v6 = vsel %vm650_vm3, %v648_v63, %v652_v4 }
 0x52c   :  { %v656_v9 = vadd.f32 1.0, %v654_v6 }
 0x5b5   :  { %v845_v16 = vpop.f32.mrf.mxu0 }
 0x5b6   :  { %576 = vrot.lane.b32.xlu1 %v845_v16, %s940_s23 }
 0x5b7   :  { %v1194_v17 = vpop.f32.mrf.mxu0 }
 0x5b9   :  { %v848_v19 = vpop.f32.mrf.mxu0 }
 0x5ba   :  { %584 = vrot.lane.b32.xlu0 %v848_v19, %s941_s24  ;;  %v658_v19 = vmul.f32 %v656_v9, %v606_v11 }
 0x5bb   :  { %v546_v20 = vpop.f32.mrf.mxu0 }
 0x5bc   :  { %580 = vrot.lane.b32.xlu1 %v546_v20, %s942_s0  ;;  %v655_v20 = vsel %vm651_vm5, %v649_v7, %v653_v10 }
 0x5bd   :  { %v851_v21 = vpop.f32.mrf.mxu0 }
 0x5bf   :  { %v1196_v22 = vpop.f32.mrf.mxu0 }
 0x5c0   :  { %592 = vrot.lane.b32.xlu1 %v851_v21, %s940_s23 }
 0x5c1   :  { %v854_v23 = vpop.f32.mrf.mxu0 }
 0x5c3   :  { %v566_v18 = vpop.f32.mrf.mxu0 }
 0x5c4   :  { %600 = vrot.lane.b32.xlu1 %v854_v23, %s941_s24  ;;  %596 = vrot.lane.b32.xlu0 %v566_v18, %s942_s0  ;;  %v657_v23 = vadd.f32 1.0, %v655_v20  ;;  %v607_v18 = vmul.f32 0.5, %v153_v29 }
 0x5c6   :  { %v659_v28 = vmul.f32 %v657_v23, %v607_v18 }
 0x628   :  { %v577_v8 = vpop.permute.xlu1 %576 }
 0x629   :  { %v587_v12 = vsel %vm199_vm1, %v1194_v17, %v577_v8 }
 0x62c   :  { %v585_v14 = vpop.permute.xlu0 %584 }
 0x62e   :  { %v581_v13 = vpop.permute.xlu1 %580 }
 0x62f   :  { %v588_v15 = vsel %vm349_vm2, %v587_v12, %v581_v13 }
 0x630   :  { %v590_v16 = vsel %vm589_vm4, %v588_v15, %v585_v14 }
 0x631   :  { %801 = vmatprep.mubr.msk.f32.mxu1 %vm26_vm0, %v590_v16 }
 0x632   :  { %751 = vmatmul.mubr.f32.vlgmr.msra.gmra.mxu1 %v658_v19  ;;  %v593_v21 = vpop.permute.xlu1 %592 }
 0x633   :  { %v603_v24 = vsel %vm199_vm1, %v1196_v22, %v593_v21 }
 0x636   :  { %v601_v25 = vpop.permute.xlu1 %600  ;;  %v597_v17 = vpop.permute.xlu0 %596 }
 0x637   :  { %v604_v26 = vsel %vm349_vm2, %v603_v24, %v597_v17 }
 0x638   :  { %v605_v27 = vsel %vm589_vm4, %v604_v26, %v601_v25 }
 0x639   :  { %802 = vmatprep.mubr.msk.f32.mxu1 %vm26_vm0, %v605_v27 }
 0x63a   :  { %756 = vmatmul.mubr.f32.gmra.mxu1 %v659_v28 }
 0x6f2   :  { %v752_v30 = vpop.f32.mrf.mxu1 }
 0x6f3   :  { %v761_v31 = vadd.f32 %v752_v30, %v983_v0 }
 0x6f4   :  { %v754_v32 = vpop.f32.mrf.mxu1 }
 0x6f5   :  { %763 = vst.msk [vmem:[#allocation2] sm:$0xff] %vm26_vm0, %v761_v31 }
 0x6fa   :  { %v757_v29 = vpop.f32.mrf.mxu1 }
 0x6fb   :  { %v762_v22 = vadd.f32 %v757_v29, %v988_v1 }
 0x6fc   :  { %v759_v33 = vpop.f32.mrf.mxu1 }
 0x6fd   :  { %764 = vst.msk [vmem:[#allocation2 + $0x8] sm:$0xff] %vm26_vm0, %v762_v22 }
 0x6fe   :  { %922 = shalt.err (!%p919_p4)
}
 0x6ff   :  { %s944_s27 = smov 128  }
 0x700   :  { %776 = dma.vmem_to_hbm [thread:$0]  %s771_s25, 256, %s1227_s6, [#allocation3], %s944_s27, %s944_s27, %s940_s23  }
 0x701   :  { %931 = dma.done.wait [#allocation3], 256  }
 0x702   :  { %932 = vsyncadd [#allocation3], 4294967040 }
 0x703   :  { %780 = vsyncpa [#allocation3], 1 }

</bundles_post_ra>
